<compile_context>
chip_gen: v7x
topology: tpu7x:2x2x1
jax: 0.10.0
libtpu: 0.0.40
codegen_flags: <defaults>
</compile_context>

<pallas_src>
import functools

import jax
import jax.numpy as jnp
from jax.experimental import pallas as pl
from jax.experimental.pallas import tpu as pltpu


# --------------------------------------------------------------------------- config

@functools.lru_cache(maxsize=None)
def _tpu_config():
    """Per-generation sizing: v5e/v6e have 128 MiB VMEM per core, v7x only 64 MiB."""
    vmem_bytes = 64 * 1024 * 1024
    try:
        info = pltpu.get_tpu_info()
        vmem_bytes = int(getattr(info, "vmem_capacity_bytes", vmem_bytes))
    except Exception:
        pass
    if vmem_bytes >= 128 * 1024 * 1024:          # v5e / v6e
        return {"vmem_limit": 96 * 1024 * 1024, "row_tile": 512, "q_tile": 256,
                "kv_tile": 512, "n_tile": 512, "f_tile": 512}
    return {"vmem_limit": 48 * 1024 * 1024, "row_tile": 256, "q_tile": 256,
            "kv_tile": 512, "n_tile": 512, "f_tile": 512}     # v7x-safe


def _tile(n, target, mult):
    """Largest multiple-of-`mult` divisor of n that is <= target (else n itself)."""
    if n <= target:
        return n
    t = (target // mult) * mult
    while t >= mult:
        if n % t == 0:
            return t
        t -= mult
    return n


def _cp(sems):
    return pltpu.CompilerParams(dimension_semantics=sems,
                                vmem_limit_bytes=_tpu_config()["vmem_limit"])


# --------------------------------------------------------------------------- kernels

def _ln_proj_kernel(x_ref, g_ref, b_ref, w_ref, bias_ref, o_ref, *, eps=1e-5):
    """Fused LayerNorm + linear projection; one N-tile of the output per grid step."""
    x = x_ref[...].astype(jnp.float32)                                 # [tm, D]
    mean = jnp.mean(x, axis=-1, keepdims=True)
    var = jnp.mean(jnp.square(x - mean), axis=-1, keepdims=True)
    y = (x - mean) * jax.lax.rsqrt(var + eps)
    y = (y * g_ref[...] + b_ref[...]).astype(jnp.bfloat16)
    h = jnp.dot(y, w_ref[...], preferred_element_type=jnp.float32) + bias_ref[...]
    o_ref[...] = h.astype(o_ref.dtype)


def _proj_kernel(x_ref, w_ref, bias_ref, o_ref):
    """Plain linear projection (no LN), N-tiled weight block."""
    h = jnp.dot(x_ref[...].astype(jnp.bfloat16), w_ref[...],
                preferred_element_type=jnp.float32) + bias_ref[...]
    o_ref[...] = h.astype(o_ref.dtype)


def _mha_kernel(q_ref, k_ref, v_ref, m_ref, res_ref, wo_ref, bo_ref, o_ref,
                acc_sc, mx_sc, l_sc, *, num_heads, scale):
    """Flash-style MHA over KV tiles + fused output projection + residual.

    Heads are unrolled; each head accumulates in place into its column slice of a
    lane-dense [tq, D] f32 scratch (no concat of lane-sparse head outputs). Online
    softmax state (m, l) is tracked per head.
    """
    ki = pl.program_id(2)
    D = res_ref.shape[-1]
    Dh = D // num_heads

    @pl.when(ki == 0)
    def _():
        acc_sc[...] = jnp.zeros_like(acc_sc)
        mx_sc[...] = jnp.full_like(mx_sc, -1e30)
        l_sc[...] = jnp.zeros_like(l_sc)

    q = q_ref[0].astype(jnp.bfloat16)                                  # [tq, D]
    k = k_ref[0].astype(jnp.bfloat16)                                  # [tk, D]
    v = v_ref[0].astype(jnp.bfloat16)                                  # [tk, D]
    mask = m_ref[0]                                                    # [tq, tk] bf16

    for h in range(num_heads):                                         # static unroll
        qh = q[:, h * Dh:(h + 1) * Dh]
        kh = k[:, h * Dh:(h + 1) * Dh]
        vh = v[:, h * Dh:(h + 1) * Dh]
        # q @ k^T without materializing a transpose: contract the Dh axis of both.
        s = jax.lax.dot_general(qh, kh, (((1,), (1,)), ((), ())),
                                preferred_element_type=jnp.float32) * scale
        s = jnp.where(mask > 0, s, jnp.float32(-1e30))
        m_prev = mx_sc[h]                                              # [tq, 1]
        m_new = jnp.maximum(m_prev, jnp.max(s, axis=-1, keepdims=True))
        alpha = jnp.exp(m_prev - m_new)
        p = jnp.exp(s - m_new)                                         # [tq, tk]
        l_sc[h] = alpha * l_sc[h] + jnp.sum(p, axis=-1, keepdims=True)
        acc_sc[:, h * Dh:(h + 1) * Dh] = (
            alpha * acc_sc[:, h * Dh:(h + 1) * Dh]
            + jnp.dot(p.astype(jnp.bfloat16), vh, preferred_element_type=jnp.float32))
        mx_sc[h] = m_new

    @pl.when(ki == pl.num_programs(2) - 1)
    def _():
        # Per-head normalization in place, then one lane-dense Wo matmul + residual.
        for h in range(num_heads):
            inv = pl.reciprocal(l_sc[h], approx=True)                  # EUP, not VALU
            acc_sc[:, h * Dh:(h + 1) * Dh] = acc_sc[:, h * Dh:(h + 1) * Dh] * inv
        out = jnp.dot(acc_sc[...].astype(jnp.bfloat16), wo_ref[...],
                      preferred_element_type=jnp.float32) + bo_ref[...]
        o_ref[0] = (res_ref[0].astype(jnp.float32) + out).astype(o_ref.dtype)


def _ln_ffn_adapter_kernel(x_ref, g_ref, be_ref, w1_ref, b1_ref, w2_ref, b2_ref,
                           *rest, has_adapter, eps=1e-5):
    """Fused LN + FFN (F-tiled, f32 accumulator) + residual, then optional fused
    domain adapter (LN + down + ReLU + up + residual) on the VMEM-resident result."""
    if has_adapter:
        (ag_ref, ab_ref, wd_ref, bd_ref, wu_ref, bu_ref, o_ref, acc_sc) = rest
    else:
        (o_ref, acc_sc) = rest

    f = pl.program_id(1)

    @pl.when(f == 0)
    def _():
        acc_sc[...] = jnp.zeros_like(acc_sc)

    x = x_ref[...].astype(jnp.float32)                                 # residual input
    mean = jnp.mean(x, axis=-1, keepdims=True)
    var = jnp.mean(jnp.square(x - mean), axis=-1, keepdims=True)
    y = ((x - mean) * jax.lax.rsqrt(var + eps) * g_ref[...] + be_ref[...])
    y = y.astype(jnp.bfloat16)
    h = jnp.dot(y, w1_ref[...], preferred_element_type=jnp.float32) + b1_ref[...]
    h = jnp.maximum(h, 0.0).astype(jnp.bfloat16)
    acc_sc[...] += jnp.dot(h, w2_ref[...], preferred_element_type=jnp.float32)

    @pl.when(f == pl.num_programs(1) - 1)
    def _():
        x1 = x + acc_sc[...] + b2_ref[...]
        if has_adapter:
            m2 = jnp.mean(x1, axis=-1, keepdims=True)
            v2 = jnp.mean(jnp.square(x1 - m2), axis=-1, keepdims=True)
            z = ((x1 - m2) * jax.lax.rsqrt(v2 + eps) * ag_ref[...] + ab_ref[...])
            z = z.astype(jnp.bfloat16)
            a = jnp.dot(z, wd_ref[...], preferred_element_type=jnp.float32) + bd_ref[...]
            a = jnp.maximum(a, 0.0).astype(jnp.bfloat16)
            x1 = x1 + jnp.dot(a, wu_ref[...], preferred_element_type=jnp.float32) + bu_ref[...]
        o_ref[...] = x1.astype(o_ref.dtype)


def _ln_kernel(x_ref, g_ref, b_ref, o_ref, *, eps=1e-5):
    x = x_ref[...].astype(jnp.float32)
    mean = jnp.mean(x, axis=-1, keepdims=True)
    var = jnp.mean(jnp.square(x - mean), axis=-1, keepdims=True)
    y = (x - mean) * jax.lax.rsqrt(var + eps)
    o_ref[...] = (y * g_ref[...] + b_ref[...]).astype(o_ref.dtype)


# --------------------------------------------------------------------------- wrappers

def fused_proj(x, w, bias, gamma=None, beta=None):
    """[B, L, D] @ [D, Nout] (+ optional fused pre-LayerNorm) -> [B, L, Nout] bf16.

    Grid is (row tiles, N tiles); the weight is DMA'd in (D, tn) column blocks so
    large projection weights never need to be VMEM-resident as one block.
    """
    B, L, D = x.shape
    M = B * L
    Nout = w.shape[1]
    cfg = _tpu_config()
    tm = _tile(M, cfg["row_tile"], 8)
    tn = _tile(Nout, cfg["n_tile"], 128)
    x2 = x.reshape(M, D)

    in_specs = [pl.BlockSpec((tm, D), lambda i, j: (i, 0))]
    args = [x2]
    if gamma is not None:
        in_specs += [pl.BlockSpec((1, D), lambda i, j: (0, 0)),
                     pl.BlockSpec((1, D), lambda i, j: (0, 0))]
        args += [gamma.reshape(1, D), beta.reshape(1, D)]
        kernel = _ln_proj_kernel
    else:
        kernel = _proj_kernel
    in_specs += [pl.BlockSpec((D, tn), lambda i, j: (0, j)),
                 pl.BlockSpec((1, tn), lambda i, j: (0, j))]
    args += [w, bias.reshape(1, Nout)]

    out = pl.pallas_call(
        kernel,
        grid=(M // tm, Nout // tn),
        in_specs=in_specs,
        out_specs=pl.BlockSpec((tm, tn), lambda i, j: (i, j)),
        out_shape=jax.ShapeDtypeStruct((M, Nout), jnp.bfloat16),
        compiler_params=_cp(("parallel", "parallel")),
    )(*args)
    return out.reshape(B, L, Nout)


def attention_block(q_arr, q_off, k_arr, k_off, v_arr, v_off, mask, residual,
                    wo, bo, num_heads):
    """residual + MHA(q, k, v) @ Wo with flash-style KV tiling.

    q_arr/k_arr/v_arr may be the same fused projection activation (e.g. [B,T,3D]);
    q_off/k_off/v_off are column-block offsets in units of D selecting the operand.
    mask: [B, T, Skv] bf16 (1 = attend, 0 = masked).
    """
    B, T, _ = q_arr.shape
    D = residual.shape[-1]
    Skv = k_arr.shape[1]
    assert D % num_heads == 0
    assert mask.shape == (B, T, Skv), (
        "mask must match the (cached) key length: expected "
        f"{(B, T, Skv)}, got {mask.shape}")
    scale = 1.0 / float(D // num_heads) ** 0.5
    cfg = _tpu_config()
    tq = _tile(T, cfg["q_tile"], 8)
    tk = _tile(Skv, cfg["kv_tile"], 128)   # multiple of 128 (mask lane dim) or full Skv

    kernel = functools.partial(_mha_kernel, num_heads=num_heads, scale=scale)
    return pl.pallas_call(
        kernel,
        grid=(B, T // tq, Skv // tk),
        in_specs=[pl.BlockSpec((1, tq, D), lambda b, qi, ki: (b, qi, q_off)),
                  pl.BlockSpec((1, tk, D), lambda b, qi, ki: (b, ki, k_off)),
                  pl.BlockSpec((1, tk, D), lambda b, qi, ki: (b, ki, v_off)),
                  pl.BlockSpec((1, tq, tk), lambda b, qi, ki: (b, qi, ki)),
                  pl.BlockSpec((1, tq, D), lambda b, qi, ki: (b, qi, 0)),
                  pl.BlockSpec((D, D), lambda b, qi, ki: (0, 0)),
                  pl.BlockSpec((1, D), lambda b, qi, ki: (0, 0))],
        out_specs=pl.BlockSpec((1, tq, D), lambda b, qi, ki: (b, qi, 0)),
        out_shape=jax.ShapeDtypeStruct((B, T, D), jnp.bfloat16),
        scratch_shapes=[pltpu.VMEM((tq, D), jnp.float32),
                        pltpu.VMEM((num_heads, tq, 1), jnp.float32),
                        pltpu.VMEM((num_heads, tq, 1), jnp.float32)],
        compiler_params=_cp(("parallel", "parallel", "arbitrary")),
    )(q_arr, k_arr, v_arr, mask, residual, wo, bo.reshape(1, D))


def ln_ffn_adapter(x, ln_g, ln_b, w1, b1, w2, b2, adapter=None):
    """Fused (LN + FFN + residual) [+ (adapter LN + down + ReLU + up + residual)]."""
    B, T, D = x.shape
    M = B * T
    F = w1.shape[1]
    cfg = _tpu_config()
    tm = _tile(M, cfg["row_tile"], 8)
    tf = _tile(F, cfg["f_tile"], 128)
    has_adapter = adapter is not None

    in_specs = [pl.BlockSpec((tm, D), lambda i, f: (i, 0)),
                pl.BlockSpec((1, D), lambda i, f: (0, 0)),
                pl.BlockSpec((1, D), lambda i, f: (0, 0)),
                pl.BlockSpec((D, tf), lambda i, f: (0, f)),
                pl.BlockSpec((1, tf), lambda i, f: (0, f)),
                pl.BlockSpec((tf, D), lambda i, f: (f, 0)),
                pl.BlockSpec((1, D), lambda i, f: (0, 0))]
    args = [x.reshape(M, D), ln_g.reshape(1, D), ln_b.reshape(1, D),
            w1, b1.reshape(1, F), w2, b2.reshape(1, D)]
    if has_adapter:
        A = adapter["Wd"].shape[1]
        in_specs += [pl.BlockSpec((1, D), lambda i, f: (0, 0)),
                     pl.BlockSpec((1, D), lambda i, f: (0, 0)),
                     pl.BlockSpec((D, A), lambda i, f: (0, 0)),
                     pl.BlockSpec((1, A), lambda i, f: (0, 0)),
                     pl.BlockSpec((A, D), lambda i, f: (0, 0)),
                     pl.BlockSpec((1, D), lambda i, f: (0, 0))]
        args += [adapter["ln_g"].reshape(1, D), adapter["ln_b"].reshape(1, D),
                 adapter["Wd"], adapter["bd"].reshape(1, A),
                 adapter["Wu"], adapter["bu"].reshape(1, D)]

    out = pl.pallas_call(
        functools.partial(_ln_ffn_adapter_kernel, has_adapter=has_adapter),
        grid=(M // tm, F // tf),
        in_specs=in_specs,
        out_specs=pl.BlockSpec((tm, D), lambda i, f: (i, 0)),
        out_shape=jax.ShapeDtypeStruct((M, D), jnp.bfloat16),
        scratch_shapes=[pltpu.VMEM((tm, D), jnp.float32)],
        compiler_params=_cp(("parallel", "arbitrary")),
    )(*args)
    return out.reshape(B, T, D)


def layer_norm(x, gamma, beta):
    B, T, D = x.shape
    M = B * T
    x2 = x.reshape(M, D)
    cfg = _tpu_config()
    tm = _tile(M, cfg["row_tile"], 8)
    out = pl.pallas_call(
        _ln_kernel,
        grid=(M // tm,),
        in_specs=[pl.BlockSpec((tm, D), lambda i: (i, 0)),
                  pl.BlockSpec((1, D), lambda i: (0, 0)),
                  pl.BlockSpec((1, D), lambda i: (0, 0))],
        out_specs=pl.BlockSpec((tm, D), lambda i: (i, 0)),
        out_shape=jax.ShapeDtypeStruct((M, D), jnp.float32),
        compiler_params=_cp(("parallel",)),
    )(x2, gamma.reshape(1, D), beta.reshape(1, D))
    return out.reshape(B, T, D)


# --------------------------------------------------------------------------- decoder layer

def decoder_layer_forward(x, memory, src_mask, trg_mask, p, enc_cache, self_cache,
                          target_domain, num_heads):
    D = x.shape[-1]
    fused_offsets_ok = (D % 128 == 0)   # column-block offsets need a 128-aligned D

    # --- self-attention sublayer: fused pre-LN + single QKV matmul -> flash MHA + res ---
    qkv = fused_proj(x, p["Wqkv"], p["bqkv"], gamma=p["ln1_g"], beta=p["ln1_b"])
    if self_cache is None and fused_offsets_ok:
        # Q/K/V read straight from the combined [B,T,3D] activation via index offsets.
        x = attention_block(qkv, 0, qkv, 1, qkv, 2, trg_mask, x,
                            p["Wo"], p["bo"], num_heads)
        k_new = qkv[:, :, D:2 * D]
        v_new = qkv[:, :, 2 * D:]
    else:
        q = qkv[:, :, :D]
        k_new = qkv[:, :, D:2 * D]
        v_new = qkv[:, :, 2 * D:]
        if self_cache is not None:
            k_new = jnp.concatenate([self_cache[0].astype(k_new.dtype), k_new], axis=1)
            v_new = jnp.concatenate([self_cache[1].astype(v_new.dtype), v_new], axis=1)
        x = attention_block(q, 0, k_new, 0, v_new, 0, trg_mask, x,
                            p["Wo"], p["bo"], num_heads)
    new_self_cache = (k_new, v_new)

    # --- encoder-decoder (cross) attention sublayer ---
    q2 = fused_proj(x, p["Wq2"], p["bq2"], gamma=p["ln2_g"], beta=p["ln2_b"])
    if enc_cache is not None:
        k2, v2 = enc_cache
        x = attention_block(q2, 0, k2, 0, v2, 0, src_mask, x,
                            p["Wo2"], p["bo2"], num_heads)
        new_enc_cache = (k2, v2)
    else:
        kv2 = fused_proj(memory, p["Wkv2"], p["bkv2"])
        if fused_offsets_ok:
            x = attention_block(q2, 0, kv2, 0, kv2, 1, src_mask, x,
                                p["Wo2"], p["bo2"], num_heads)
            new_enc_cache = (kv2[:, :, :D], kv2[:, :, D:])
        else:
            k2 = kv2[:, :, :D]
            v2 = kv2[:, :, D:]
            x = attention_block(q2, 0, k2, 0, v2, 0, src_mask, x,
                                p["Wo2"], p["bo2"], num_heads)
            new_enc_cache = (k2, v2)

    # --- feed-forward + domain adapter fused into one kernel ---
    adapter = p["adapters"][target_domain] if target_domain is not None else None
    x = ln_ffn_adapter(x, p["ln3_g"], p["ln3_b"], p["W1"], p["b1"], p["W2"], p["b2"],
                       adapter=adapter)
    return x, new_enc_cache, new_self_cache


# --------------------------------------------------------------------------- module

class TransformerDecoderWithAdapter:
    def __init__(self, feature_size, num_layers, num_heads, ffn_size, adapter_size,
                 domains, key):
        self.feature_size = feature_size
        self.num_layers = num_layers
        self.num_heads = num_heads
        self.domain_adapter_dict = {d: adapter_size for d in domains}
        self.adapter_type = "stack"
        self.adapter_fusion = False

        def wgt(k, shape, scale=0.02):
            # Weights pre-cast to bf16 once here (wrapper-side), per perf review.
            return (jax.random.normal(k, shape, jnp.float32) * scale).astype(jnp.bfloat16)

        D, F, A = feature_size, ffn_size, adapter_size
        keys = iter(jax.random.split(key, num_layers * (8 + 2 * len(domains)) + 4))
        self.layers = []
        for _ in range(num_layers):
            p = {
                "ln1_g": jnp.ones((D,), jnp.float32), "ln1_b": jnp.zeros((D,), jnp.float32),
                "ln2_g": jnp.ones((D,), jnp.float32), "ln2_b": jnp.zeros((D,), jnp.float32),
                "ln3_g": jnp.ones((D,), jnp.float32), "ln3_b": jnp.zeros((D,), jnp.float32),
                # fused Q|K|V projection for self-attention
                "Wqkv": wgt(next(keys), (D, 3 * D)),
                "bqkv": jnp.zeros((3 * D,), jnp.float32),
                "Wo": wgt(next(keys), (D, D)), "bo": jnp.zeros((D,), jnp.float32),
                # cross-attention: Q over x, fused K|V over memory
                "Wq2": wgt(next(keys), (D, D)), "bq2": jnp.zeros((D,), jnp.float32),
                "Wkv2": wgt(next(keys), (D, 2 * D)),
                "bkv2": jnp.zeros((2 * D,), jnp.float32),
                "Wo2": wgt(next(keys), (D, D)), "bo2": jnp.zeros((D,), jnp.float32),
                "W1": wgt(next(keys), (D, F)), "b1": jnp.zeros((F,), jnp.float32),
                "W2": wgt(next(keys), (F, D)), "b2": jnp.zeros((D,), jnp.float32),
                "adapters": {},
            }
            for d in domains:
                p["adapters"][d] = {
                    "ln_g": jnp.ones((D,), jnp.float32), "ln_b": jnp.zeros((D,), jnp.float32),
                    "Wd": wgt(next(keys), (D, A)), "bd": jnp.zeros((A,), jnp.float32),
                    "Wu": wgt(next(keys), (A, D)), "bu": jnp.zeros((D,), jnp.float32),
                }
            self.layers.append(p)
        self.final_ln_g = jnp.ones((D,), jnp.float32)
        self.final_ln_b = jnp.zeros((D,), jnp.float32)

    def forward(self, x, memory, src_mask, trg_mask, enc_attn_cache_list=None,
                self_attn_cache_list=None, target_domain=None, mix_output=False,
                used_domain_list=None, mix_weight=None, domain_mask=None):
        if self_attn_cache_list is None:
            self_attn_cache_list = [None] * self.num_layers
        if enc_attn_cache_list is None:
            enc_attn_cache_list = [None] * self.num_layers

        # bf16 activations between kernels; masks cast to bf16 once (hoisted out of
        # the per-layer calls), 1.0 = attend / 0.0 = masked convention.
        x = x.astype(jnp.bfloat16)
        memory = memory.astype(jnp.bfloat16)
        src_mask = src_mask.astype(jnp.bfloat16)
        trg_mask = trg_mask.astype(jnp.bfloat16)

        new_enc_attn_cache_list = []
        new_self_attn_cache_list = []
        layers_adapter_output = []
        calculate_mix_weights = []
        for i, layer_params in enumerate(self.layers):
            if isinstance(target_domain, list):
                cur_layer_target_domain = target_domain[i]
            else:
                cur_layer_target_domain = target_domain
            if mix_output is True:
                # TODO(synk): mix_output / adapter-fusion path depends on the (unprovided)
                # layer's fusion definition; only the standard single-domain path is kernelized.
                raise NotImplementedError("mix_output adapter fusion path not implemented")
            x, new_enc_attn_cache, new_self_attn_cache = decoder_layer_forward(
                x, memory, src_mask, trg_mask, layer_params,
                enc_attn_cache_list[i], self_attn_cache_list[i],
                cur_layer_target_domain, self.num_heads)
            layers_adapter_output.append(x)
            new_self_attn_cache_list = new_self_attn_cache_list + [new_self_attn_cache]
            new_enc_attn_cache_list = new_enc_attn_cache_list + [new_enc_attn_cache]
        final = layer_norm(x, self.final_ln_g, self.final_ln_b)
        if mix_output is True:
            return (final, layers_adapter_output, new_enc_attn_cache_list,
                    new_self_attn_cache_list, calculate_mix_weights)
        return (final, layers_adapter_output, new_enc_attn_cache_list,
                new_self_attn_cache_list)


# --------------------------------------------------------------------------- main

if __name__ == "__main__":
    B, T, S, D = 2, 8, 8, 128       # batch, target seq, source seq, feature
    H, FFN, ADP = 4, 256, 32        # heads, ffn hidden, adapter bottleneck
    NUM_LAYERS = 2
    DOMAINS = ["domain_a", "domain_b"]

    root = jax.random.PRNGKey(0)
    k_x, k_m, k_p = jax.random.split(root, 3)

    x = jax.random.normal(k_x, (B, T, D), jnp.float32)
    memory = jax.random.normal(k_m, (B, S, D), jnp.float32)
    src_mask = jnp.ones((B, T, S), jnp.float32)                                   # attend everywhere
    trg_mask = jnp.tril(jnp.ones((T, T), jnp.float32))[None].repeat(B, axis=0)    # causal

    decoder = TransformerDecoderWithAdapter(D, NUM_LAYERS, H, FFN, ADP, DOMAINS, k_p)

    out, layers_out, enc_caches, self_caches = decoder.forward(
        x, memory, src_mask, trg_mask, target_domain="domain_a")

    jax.block_until_ready(out)
    assert out.shape == (B, T, D)
    assert len(layers_out) == NUM_LAYERS
    assert len(enc_caches) == NUM_LAYERS and len(self_caches) == NUM_LAYERS
    assert bool(jnp.all(jnp.isfinite(out)))
    print("KERNEL_OK")
</pallas_src>

<mosaic_0001>
module attributes {stable_mosaic.version = 11 : i64} {
  func.func @_ln_proj_kernel(%arg0: i32, %arg1: i32, %arg2: memref<16x128xbf16, #tpu.memory_space<vmem>>, %arg3: memref<1x128xf32, #tpu.memory_space<vmem>>, %arg4: memref<1x128xf32, #tpu.memory_space<vmem>>, %arg5: memref<128x384xbf16, #tpu.memory_space<vmem>>, %arg6: memref<1x384xf32, #tpu.memory_space<vmem>>, %arg7: memref<16x384xbf16, #tpu.memory_space<vmem>>) attributes {dimension_semantics = [#tpu.dimension_semantics<parallel>, #tpu.dimension_semantics<parallel>], iteration_bounds = array<i64: 1, 1>, scalar_prefetch = 0 : i64, scratch_operands = 0 : i64, tpu.core_type = #tpu.core_type<tc>, window_params = [{transform_indices = @transform_0, window_bounds = array<i64: 16, 128>}, {pipeline_mode = #tpu.pipeline_mode<synchronous>, transform_indices = @transform_1, window_bounds = array<i64: 1, 128>}, {pipeline_mode = #tpu.pipeline_mode<synchronous>, transform_indices = @transform_2, window_bounds = array<i64: 1, 128>}, {transform_indices = @transform_3, window_bounds = array<i64: 128, 384>}, {transform_indices = @transform_4, window_bounds = array<i64: 1, 384>}, {transform_indices = @transform_5, window_bounds = array<i64: 16, 384>}]} {
    %c0 = arith.constant 0 : index
    %c0_0 = arith.constant 0 : index
    %0 = vector.load %arg2[%c0, %c0_0] : memref<16x128xbf16, #tpu.memory_space<vmem>>, vector<16x128xbf16>
    %1 = arith.extf %0 : vector<16x128xbf16> to vector<16x128xf32>
    %cst = arith.constant dense<0.000000e+00> : vector<16xf32>
    %2 = vector.multi_reduction <add>, %1, %cst [1] : vector<16x128xf32> to vector<16xf32>
    %3 = vector.shape_cast %2 : vector<16xf32> to vector<16x1xf32>
    %cst_1 = arith.constant 1.280000e+02 : f32
    %4 = vector.broadcast %cst_1 : f32 to vector<16x1xf32>
    %5 = arith.divf %3, %4 : vector<16x1xf32>
    %6 = vector.broadcast %5 : vector<16x1xf32> to vector<16x128xf32>
    %7 = arith.subf %1, %6 : vector<16x128xf32>
    %8 = arith.mulf %7, %7 : vector<16x128xf32>
    %cst_2 = arith.constant dense<0.000000e+00> : vector<16xf32>
    %9 = vector.multi_reduction <add>, %8, %cst_2 [1] : vector<16x128xf32> to vector<16xf32>
    %10 = vector.shape_cast %9 : vector<16xf32> to vector<16x1xf32>
    %cst_3 = arith.constant 1.280000e+02 : f32
    %11 = vector.broadcast %cst_3 : f32 to vector<16x1xf32>
    %12 = arith.divf %10, %11 : vector<16x1xf32>
    %13 = vector.broadcast %5 : vector<16x1xf32> to vector<16x128xf32>
    %14 = arith.subf %1, %13 : vector<16x128xf32>
    %cst_4 = arith.constant 9.99999974E-6 : f32
    %15 = vector.broadcast %cst_4 : f32 to vector<16x1xf32>
    %16 = arith.addf %12, %15 : vector<16x1xf32>
    %17 = math.rsqrt %16 : vector<16x1xf32>
    %18 = vector.broadcast %17 : vector<16x1xf32> to vector<16x128xf32>
    %19 = arith.mulf %14, %18 : vector<16x128xf32>
    %c0_5 = arith.constant 0 : index
    %c0_6 = arith.constant 0 : index
    %20 = vector.load %arg3[%c0_5, %c0_6] : memref<1x128xf32, #tpu.memory_space<vmem>>, vector<1x128xf32>
    %21 = vector.broadcast %20 : vector<1x128xf32> to vector<16x128xf32>
    %22 = arith.mulf %19, %21 : vector<16x128xf32>
    %c0_7 = arith.constant 0 : index
    %c0_8 = arith.constant 0 : index
    %23 = vector.load %arg4[%c0_7, %c0_8] : memref<1x128xf32, #tpu.memory_space<vmem>>, vector<1x128xf32>
    %24 = vector.broadcast %23 : vector<1x128xf32> to vector<16x128xf32>
    %25 = arith.addf %22, %24 : vector<16x128xf32>
    %26 = arith.truncf %25 : vector<16x128xf32> to vector<16x128xbf16>
    %c0_9 = arith.constant 0 : index
    %c0_10 = arith.constant 0 : index
    %27 = vector.load %arg5[%c0_9, %c0_10] : memref<128x384xbf16, #tpu.memory_space<vmem>>, vector<128x384xbf16>
    %cst_11 = arith.constant dense<0.000000e+00> : vector<16x384xf32>
    %28 = tpu.matmul %26, %27, %cst_11 {dimension_numbers = #tpu.dot_dimension_numbers<[1], [0], [0], [1], [0, 0, 1, 1], [], []>} : vector<16x128xbf16>, vector<128x384xbf16>, vector<16x384xf32> -> vector<16x384xf32>
    %c0_12 = arith.constant 0 : index
    %c0_13 = arith.constant 0 : index
    %29 = vector.load %arg6[%c0_12, %c0_13] : memref<1x384xf32, #tpu.memory_space<vmem>>, vector<1x384xf32>
    %30 = vector.broadcast %29 : vector<1x384xf32> to vector<16x384xf32>
    %31 = arith.addf %28, %30 : vector<16x384xf32>
    %32 = arith.truncf %31 : vector<16x384xf32> to vector<16x384xbf16>
    %c0_14 = arith.constant 0 : index
    %c0_15 = arith.constant 0 : index
    %33 = vector.load %arg7[%c0_14, %c0_15] : memref<16x384xbf16, #tpu.memory_space<vmem>>, vector<16x384xbf16>
    tpu.vector_store %arg7[%c0_14, %c0_15], %32 {strides = array<i32>} : memref<16x384xbf16, #tpu.memory_space<vmem>>, vector<16x384xbf16>,
    return
  }
  func.func @transform_0(%arg0: i32, %arg1: i32) -> (i32, i32) {
    %c0_i32 = arith.constant 0 : i32
    %c0_i32_0 = arith.constant 0 : i32
    return %arg0, %c0_i32 : i32, i32
  }
  func.func @transform_1(%arg0: i32, %arg1: i32) -> (i32, i32) {
    %c0_i32 = arith.constant 0 : i32
    %c0_i32_0 = arith.constant 0 : i32
    %c0_i32_1 = arith.constant 0 : i32
    return %c0_i32, %c0_i32_0 : i32, i32
  }
  func.func @transform_2(%arg0: i32, %arg1: i32) -> (i32, i32) {
    %c0_i32 = arith.constant 0 : i32
    %c0_i32_0 = arith.constant 0 : i32
    %c0_i32_1 = arith.constant 0 : i32
    return %c0_i32, %c0_i32_0 : i32, i32
  }
  func.func @transform_3(%arg0: i32, %arg1: i32) -> (i32, i32) {
    %c0_i32 = arith.constant 0 : i32
    %c0_i32_0 = arith.constant 0 : i32
    return %c0_i32, %arg1 : i32, i32
  }
  func.func @transform_4(%arg0: i32, %arg1: i32) -> (i32, i32) {
    %c0_i32 = arith.constant 0 : i32
    %c0_i32_0 = arith.constant 0 : i32
    return %c0_i32, %arg1 : i32, i32
  }
  func.func @transform_5(%arg0: i32, %arg1: i32) -> (i32, i32) {
    %c0_i32 = arith.constant 0 : i32
    return %arg0, %arg1 : i32, i32
  }
}

</mosaic_0001>

<bundles_post_ra>
// kernel: tpu_custom_call.1
= control target key start
LH: loop header
LB: loop body
LE: loop exit
PB: predicated region body
PF: predicated region fallthrough
CT: control target
= control target key end

     0   :  { %10 = vsyncpa [#allocation3], 0  ;;  %s694_s0 = inlined_call_operand.hbm [shape: bf16[16,128], index: 0, kind: input, shape index: {}]   ;;  %s695_s1 = inlined_call_operand.vmem [shape: f32[1,128], index: 1, kind: input, shape index: {}]   ;;  %s696_s2 = inlined_call_operand.vmem [shape: f32[1,128], index: 2, kind: input, shape index: {}]   ;;  %s697_s3 = inlined_call_operand.hbm [shape: bf16[128,384], index: 3, kind: input, shape index: {}]   ;;  %s698_s4 = inlined_call_operand.vmem [shape: f32[1,384], index: 4, kind: input, shape index: {}]   ;;  %s699_s5 = inlined_call_operand.hbm [shape: bf16[16,384], index: 5, kind: output, shape index: {}]  }
   0x1   :  { %11 = vsyncpa [#allocation6], 0 }
   0x2   :  { %12 = vsyncpa [#allocation4], 0  ;;  %s584_s18 = smov [#allocation2]   ;;  %s512_s22 = scalar_lea.hbm %s694_s0, 128 }
   0x3   :  { %s18_s19 = sshll.u32 %s584_s18, 4  ;;  %p513_p0 = scmp.ne.s32.totalorder %s694_s0, %s512_s22  ;;  %s19_s19 = int_to_ptr.vmem [resolvable:$true] %s18_s19 }
   0x4   :  { %p516_p1 = scmp.lt.u32.totalorder %s512_s22, %s694_s0 }
   0x6   :  { %p518_p2 = pnand %p516_p1, %p513_p0 }
   0x8   :  { %521 = shalt.err (!%p518_p2)
}
   0x9   :  { %s522_s27 = scalar_lea.vmem %s19_s19, 128  ;;  %p527_p4 = scmp.lt.s32.totalorder %s19_s19, %s19_s19 }
   0xa   :  { %p523_p3 = scmp.ne.s32.totalorder %s19_s19, %s522_s27  ;;  %p528_p5 = scmp.lt.s32.totalorder %s522_s27, %s522_s27 }
   0xc   :  { %p529_p6 = por %p528_p5, %p527_p4 }
   0xe   :  { %p530_p7 = pnand %p529_p6, %p523_p3 }
  0x10   :  { %533 = shalt.err (!%p530_p7)
}
  0x11   :  { %s585_s28 = smov 64   ;;  %s586_s29 = smov 4  }
  0x12   :  { %24 = dma.hbm_to_vmem [thread:$0]  %s694_s0, 128, %s19_s19, [#allocation3], %s585_s28, %s585_s28, %s586_s29  }
  0x13   :  { %s587_s7 = smov [#allocation5]   ;;  %s534_s11 = scalar_lea.hbm %s697_s3, 3072 }
  0x14   :  { %s34_s8 = sshll.u32 %s587_s7, 4  ;;  %p535_p8 = scmp.ne.s32.totalorder %s697_s3, %s534_s11  ;;  %s35_s8 = int_to_ptr.vmem [resolvable:$true] %s34_s8 }
  0x15   :  { %p538_p9 = scmp.lt.u32.totalorder %s534_s11, %s697_s3 }
  0x17   :  { %p540_p10 = pnand %p538_p9, %p535_p8 }
  0x19   :  { %543 = shalt.err (!%p540_p10)
}
  0x1a   :  { %s544_s16 = scalar_lea.vmem %s35_s8, 3072  ;;  %p549_p12 = scmp.lt.s32.totalorder %s35_s8, %s35_s8 }
  0x1b   :  { %p545_p11 = scmp.ne.s32.totalorder %s35_s8, %s544_s16  ;;  %p550_p13 = scmp.lt.s32.totalorder %s544_s16, %s544_s16 }
  0x1d   :  { %p551_p0 = por %p550_p13, %p549_p12 }
  0x1f   :  { %p552_p1 = pnand %p551_p0, %p545_p11 }
  0x21   :  { %555 = shalt.err (!%p552_p1)
}
  0x22   :  { %s588_s0 = smov 192   ;;  %s589_s17 = smov 12  }
  0x23   :  { %40 = dma.hbm_to_vmem [thread:$0]  %s697_s3, 3072, %s35_s8, [#allocation6], %s588_s0, %s588_s0, %s589_s17  }
  0x24   :  { %578 = dma.done.wait [#allocation3], 128  }
  0x25   :  { %579 = vsyncadd [#allocation3], 4294967168 }
  0x26   :  { %580 = dma.done.wait [#allocation6], 3072  }
  0x27   :  { %581 = vsyncadd [#allocation6], 4294964224  ;;  %v434_v0 = vld [vmem:[#allocation2] sm:$0xff]   ;;  %v476_v3 = vld [vmem:[#allocation5 + $0x4] ss:$12 sps:$4 sm:$0xff]   ;;  %v590_v5 = vmov 0.0   ;;  %v130_v54 = vlaneseq }
  0x28   :  { %v435_v1 = vunpack.c.l.bf16 %v434_v0  ;;  %v436_v2 = vunpack.c.h.bf16 %v434_v0  ;;  %v478_v4 = vld [vmem:[#allocation5] ss:$12 sps:$4 sm:$0xff]   ;;  %446 = vmatprep.subr.bf16.mxu1 %v590_v5  ;;  %v479_v6 = vld [vmem:[#allocation5 + $0x8] ss:$12 sps:$4 sm:$0xff]   ;;  %273 = vmatprep.subr.bf16.mxu0 %v476_v3  ;;  %v482_v16 = vld [vmem:[#allocation5 + $0x18] ss:$12 sps:$4 sm:$0xff]  }
  0x29   :  { %v480_v7 = vld [vmem:[#allocation5 + $0x1c] ss:$12 sps:$4 sm:$0xff]   ;;  %274 = vmatpush1.bf16.msra.mxu0 %v478_v4  ;;  %447 = vmatpush3.bf16.msra.mxu1 %v479_v6  ;;  %v483_v17 = vld [vmem:[#allocation5 + $0x20] ss:$12 sps:$4 sm:$0xff]   ;;  %v487_v20 = vld [vmem:[#allocation5 + $0x38] ss:$12 sps:$4 sm:$0xff]  }
  0x2a   :  { %54 = vadd.xlane.f32.xlu0 %v435_v1  ;;  %275 = vmatprep.subr.bf16.mxu0 %v480_v7  ;;  %v484_v18 = vld [vmem:[#allocation5 + $0x34] ss:$12 sps:$4 sm:$0xff]   ;;  %v486_v19 = vld [vmem:[#allocation5 + $0x30] ss:$12 sps:$4 sm:$0xff]   ;;  %v488_v21 = vld [vmem:[#allocation5 + $0x4c] ss:$12 sps:$4 sm:$0xff]  }
  0x2b   :  { %448 = vmatprep.subr.bf16.mxu1 %v590_v5  ;;  %v490_v22 = vld [vmem:[#allocation5 + $0x48] ss:$12 sps:$4 sm:$0xff]   ;;  %v491_v23 = vld [vmem:[#allocation5 + $0x50] ss:$12 sps:$4 sm:$0xff]   ;;  %v494_v25 = vld [vmem:[#allocation5 + $0x60] ss:$12 sps:$4 sm:$0xff]  }
  0x2c   :  { %v492_v24 = vld [vmem:[#allocation5 + $0x64] ss:$12 sps:$4 sm:$0xff]   ;;  %v495_v26 = vld [vmem:[#allocation5 + $0x68] ss:$12 sps:$4 sm:$0xff]   ;;  %v499_v29 = vld [vmem:[#allocation5 + $0x80] ss:$12 sps:$4 sm:$0xff]  }
  0x2d   :  { %276 = vmatpush1.bf16.msra.mxu0 %v482_v16  ;;  %449 = vmatpush3.bf16.msra.mxu1 %v483_v17  ;;  %v496_v27 = vld [vmem:[#allocation5 + $0x7c] ss:$12 sps:$4 sm:$0xff]   ;;  %v498_v28 = vld [vmem:[#allocation5 + $0x78] ss:$12 sps:$4 sm:$0xff]   ;;  %v500_v30 = vld [vmem:[#allocation5 + $0x94] ss:$12 sps:$4 sm:$0xff]  }
  0x2e   :  { %56 = vadd.xlane.f32.xlu0 %v436_v2  ;;  %450 = vmatprep.subr.bf16.mxu1 %v590_v5  ;;  %v591_v31 = vmov 0   ;;  %vm592_vm0 = vmmov 0   ;;  %v502_v32 = vld [vmem:[#allocation5 + $0x90] ss:$12 sps:$4 sm:$0xff]   ;;  %v503_v33 = vld [vmem:[#allocation5 + $0x98] ss:$12 sps:$4 sm:$0xff]  }
  0x2f   :  { %277 = vmatprep.subr.bf16.mxu0 %v484_v18  ;;  %305 = vmatprep.mubr.bf16.mxu0 %v591_v31  ;;  %v504_v34 = vld [vmem:[#allocation5 + $0xac] ss:$12 sps:$4 sm:$0xff]   ;;  %v506_v35 = vld [vmem:[#allocation5 + $0xa8] ss:$12 sps:$4 sm:$0xff]   ;;  %v507_v36 = vld [vmem:[#allocation5 + $0xb0] ss:$12 sps:$4 sm:$0xff]  }
  0x30   :  { %462 = vmatprep.mubr.msk.bf16.mxu1 %vm592_vm0, %v590_v5  ;;  %v399_v45 = vld [vmem:[%s695_s1] ss:$0 sm:$0xff]  ;;  %v131_v55 = vshrl.u32 %v130_v54, 7 }
  0x31   :  { %278 = vmatpush1.bf16.msra.mxu0 %v486_v19  ;;  %451 = vmatpush3.bf16.msra.mxu1 %v487_v20  ;;  %v400_v49 = vld [vmem:[%s696_s2] ss:$0 sm:$0xff]  ;;  %s593_s2 = smov [#allocation7]  }
  0x32   :  { %452 = vmatprep.subr.bf16.mxu1 %v590_v5  ;;  %279 = vmatprep.subr.bf16.mxu0 %v488_v21  ;;  %v132_v56 = vsub.s32 0, %v131_v55  ;;  %v140_v57 = vsub.s32 2, %v131_v55  ;;  %v128_v58 = vld [vmem:[%s698_s4] sm:$0x7]  ;;  %v136_v59 = vsub.s32 1, %v131_v55  ;;  %s386_s4 = sshll.u32 %s593_s2, 4  ;;  %s387_s4 = int_to_ptr.vmem [resolvable:$true] %s386_s4 }
  0x33   :  { %s556_s24 = scalar_lea.vmem %s387_s4, 384  ;;  %p561_p3 = scmp.lt.s32.totalorder %s387_s4, %s387_s4 }
  0x34   :  { %v133_v60 = vrot.slane %v128_v58, %v132_v56  ;;  %v141_v61 = vrot.slane %v128_v58, %v140_v57  ;;  %v137_v62 = vrot.slane %v128_v58, %v136_v59  ;;  %p557_p2 = scmp.ne.s32.totalorder %s387_s4, %s556_s24  ;;  %p562_p4 = scmp.lt.s32.totalorder %s556_s24, %s556_s24 }
  0x35   :  { %280 = vmatpush1.bf16.msra.mxu0 %v490_v22  ;;  %453 = vmatpush3.bf16.msra.mxu1 %v491_v23 }
  0x36   :  { %454 = vmatprep.subr.bf16.mxu1 %v590_v5  ;;  %281 = vmatprep.subr.bf16.mxu0 %v492_v24  ;;  %p563_p5 = por %p562_p4, %p561_p3 }
  0x38   :  { %p564_p6 = pnand %p563_p5, %p557_p2 }
  0x39   :  { %282 = vmatpush1.bf16.msra.mxu0 %v494_v25  ;;  %455 = vmatpush3.bf16.msra.mxu1 %v495_v26 }
  0x3a   :  { %283 = vmatprep.subr.bf16.mxu0 %v496_v27  ;;  %456 = vmatprep.subr.bf16.mxu1 %v590_v5 }
  0x3d   :  { %284 = vmatpush1.bf16.msra.mxu0 %v498_v28  ;;  %457 = vmatpush3.bf16.msra.mxu1 %v499_v29 }
  0x3e   :  { %285 = vmatprep.subr.bf16.mxu0 %v500_v30  ;;  %458 = vmatprep.subr.bf16.mxu1 %v590_v5 }
  0x41   :  { %286 = vmatpush1.bf16.msra.mxu0 %v502_v32  ;;  %459 = vmatpush3.bf16.msra.mxu1 %v503_v33 }
  0x42   :  { %287 = vmatprep.subr.bf16.mxu0 %v504_v34  ;;  %460 = vmatprep.subr.bf16.mxu1 %v590_v5 }
  0x45   :  { %288 = vmatpush1.bf16.msra.mxu0 %v506_v35  ;;  %461 = vmatpush3.bf16.msra.mxu1 %v507_v36 }
  0xb7   :  { %v55_v8 = vpop.xlane.xlu0 %54 }
  0xb8   :  { %v59_v9 = vmul.f32 0.0078125, %v55_v8 }
  0xba   :  { %v653_v10 = vsub.f32 %v435_v1, %v59_v9 }
  0xbb   :  { %v57_v11 = vpop.xlane.xlu0 %56 }
  0xbc   :  { %v60_v12 = vmul.f32 0.0078125, %v57_v11  ;;  %v63_v13 = vmul.f32 %v653_v10, %v653_v10 }
  0xbe   :  { %v657_v14 = vsub.f32 %v436_v2, %v60_v12  ;;  %65 = vadd.xlane.f32.xlu1 %v63_v13 }
  0xc0   :  { %v64_v15 = vmul.f32 %v657_v14, %v657_v14 }
  0xc2   :  { %67 = vadd.xlane.f32.xlu1 %v64_v15 }
 0x14b   :  { %v66_v37 = vpop.xlane.xlu1 %65 }
 0x14c   :  { %v69_v38 = vmul.f32 0.0078125, %v66_v37 }
 0x14e   :  { %v71_v39 = vadd.f32 1e-05, %v69_v38 }
 0x14f   :  { %v68_v40 = vpop.xlane.xlu1 %67 }
 0x150   :  { %508 = vrsqrt.f32 %v71_v39  ;;  %v70_v41 = vmul.f32 0.0078125, %v68_v40 }
 0x152   :  { %v72_v42 = vadd.f32 1e-05, %v70_v41 }
 0x154   :  { %510 = vrsqrt.f32 %v72_v42 }
 0x15a   :  { %v509_v43 = vpop.eup %508 }
 0x15b   :  { %v75_v44 = vmul.f32 %v509_v43, %v653_v10 }
 0x15d   :  { %v84_v48 = vmul.f32 %v399_v45, %v75_v44 }
 0x15e   :  { %v511_v46 = vpop.eup %510 }
 0x15f   :  { %v76_v47 = vmul.f32 %v511_v46, %v657_v14  ;;  %v93_v51 = vadd.f32 %v400_v49, %v84_v48 }
 0x161   :  { %v85_v50 = vmul.f32 %v399_v45, %v76_v47 }
 0x163   :  { %v94_v52 = vadd.f32 %v400_v49, %v85_v50 }
 0x165   :  { %v95_v53 = vpack.c.bf16 %v94_v52, %v93_v51 }
 0x167   :  { %306 = vmatmul.mubr.bf16.vlgmr.msra.gmra.mrb[0].mxu0 %v95_v53  ;;  %463 = vmatmul.mubr.bf16.vlgmr.msra.gmra.mrb[0].mxu1 %v95_v53 }
 0x23a   :  { %v307_v63 = vpop.f32.mrb[0].mxu0  ;;  %v350_v0 = vpop.f32.mrb[0].mxu1 }
 0x23b   :  { %v308_v1 = vadd.f32 %v307_v63, %v133_v60  ;;  %v351_v2 = vadd.f32 %v350_v0, %v141_v61  ;;  %v309_v3 = vpop.f32.mrb[1].mxu0  ;;  %v464_v4 = vpop.f32.mrb[1].mxu1 }
 0x23c   :  { %v310_v5 = vadd.f32 %v309_v3, %v137_v62  ;;  %v311_v6 = vpop.f32.mrb[2].mxu0  ;;  %v353_v7 = vpop.f32.mrb[2].mxu1 }
 0x23d   :  { %v430_v8 = vpack.c.bf16 %v351_v2, %v351_v2  ;;  %v312_v9 = vadd.f32 %v311_v6, %v133_v60  ;;  %v354_v10 = vadd.f32 %v353_v7, %v141_v61  ;;  %v313_v11 = vpop.f32.mrb[3].mxu0  ;;  %v465_v12 = vpop.f32.mrb[3].mxu1 }
 0x23e   :  { %v429_v13 = vpack.c.bf16 %v310_v5, %v308_v1  ;;  %v314_v14 = vadd.f32 %v313_v11, %v137_v62 }
 0x23f   :  { %378 = vst [vmem:[#allocation7 + $0x8] sm:$0xf] %v430_v8  ;;  %v432_v15 = vpack.c.bf16 %v354_v10, %v354_v10 }
 0x240   :  { %377 = vst [vmem:[#allocation7] sm:$0xff] %v429_v13  ;;  %v431_v16 = vpack.c.bf16 %v314_v14, %v312_v9 }
 0x241   :  { %380 = vst [vmem:[#allocation7 + $0x14] sm:$0xf] %v432_v15 }
 0x242   :  { %379 = vst [vmem:[#allocation7 + $0xc] sm:$0xff] %v431_v16 }
 0x243   :  { %567 = shalt.err (!%p564_p6)
}
 0x244   :  { %s568_s27 = scalar_lea.hbm %s699_s5, 384 }
 0x245   :  { %p569_p7 = scmp.ne.s32.totalorder %s699_s5, %s568_s27  ;;  %p572_p8 = scmp.lt.u32.totalorder %s568_s27, %s699_s5 }
 0x247   :  { %p574_p9 = pnand %p572_p8, %p569_p7 }
 0x249   :  { %577 = shalt.err (!%p574_p9)
}
 0x24a   :  { %392 = dma.vmem_to_hbm [thread:$0]  %s387_s4, 384, %s699_s5, [#allocation4], %s588_s0, %s588_s0, %s589_s17  }
 0x24b   :  { %582 = dma.done.wait [#allocation4], 384  }
 0x24c   :  { %583 = vsyncadd [#allocation4], 4294966912 }
 0x24d   :  { %396 = vsyncpa [#allocation3], 1 }
 0x24e   :  { %397 = vsyncpa [#allocation6], 1 }
 0x24f   :  { %398 = vsyncpa [#allocation4], 1 }

</bundles_post_ra>
